<compile_context>
chip_gen: v7x
topology: tpu7x:2x2x1
jax: 0.10.0
libtpu: 0.0.40
codegen_flags: <defaults>
</compile_context>

<pallas_src>
import jax
import jax.numpy as jnp
from jax.experimental import pallas as pl
from jax.experimental.pallas import tpu as pltpu

# ------------------------- small config -------------------------
B = 2             # batch
N = 8             # num_points (multiple of 8 keeps the in-kernel reshapes tile-aligned)
INPUT_DIM = 3     # input point-cloud features
HID = 32          # hid_d
LATENT = 8        # latent
FEATS = 16        # feats (output embedding dim)
EQUIV_LAYERS = 2
SUM_SCALE = 0.01
NEG_SLOPE = 0.01  # F.leaky_relu default


def _lrelu(v):
    return jnp.where(v >= 0, v, NEG_SLOPE * v)


# ------------------------- packed parameter layout -------------------------
def _build_layout():
    """Every parameter block gets an 8-row-aligned slot in a (rows, 32) buffer."""
    entries = [
        ("wl1", INPUT_DIM, HID), ("bl1", 1, HID),
        ("wl2", HID, HID),       ("bl2", 1, HID),
        ("wg1", 2 * HID, HID),   ("bg1", 1, HID),
        ("wg2", HID, LATENT),    ("bg2", 1, LATENT),
    ]
    for i in range(EQUIV_LAYERS):
        entries += [
            (f"ewg1_{i}", 2 * HID + LATENT, HID), (f"ebg1_{i}", 1, HID),
            (f"ewg2_{i}", HID, LATENT),           (f"ebg2_{i}", 1, LATENT),
            (f"ewl1_{i}", HID + LATENT, HID),     (f"ebl1_{i}", 1, HID),
            (f"ewl2_{i}", HID, HID),              (f"ebl2_{i}", 1, HID),
        ]
    entries += [("wl3", HID, FEATS), ("bl3", 1, FEATS)]

    layout, off = {}, 0
    for name, rows, cols in entries:
        layout[name] = (off, rows, cols)
        off += -(-rows // 8) * 8          # pad each block to a multiple of 8 rows
    return layout, off


LAYOUT, PACK_ROWS = _build_layout()
PACK_COLS = HID                           # widest out-dim; smaller ones zero-padded


def pack_params(p):
    buf = jnp.zeros((PACK_ROWS, PACK_COLS), jnp.float32)

    def put(buf, name, val):
        off, rows, cols = LAYOUT[name]
        return buf.at[off:off + rows, :cols].set(val.reshape(rows, cols))

    buf = put(buf, "wl1", p["wl1"]); buf = put(buf, "bl1", p["bl1"])
    buf = put(buf, "wl2", p["wl2"]); buf = put(buf, "bl2", p["bl2"])
    buf = put(buf, "wg1", p["wg1"]); buf = put(buf, "bg1", p["bg1"])
    buf = put(buf, "wg2", p["wg2"]); buf = put(buf, "bg2", p["bg2"])
    for i in range(EQUIV_LAYERS):
        buf = put(buf, f"ewg1_{i}", p["ewg1"][i]); buf = put(buf, f"ebg1_{i}", p["ebg1"][i])
        buf = put(buf, f"ewg2_{i}", p["ewg2"][i]); buf = put(buf, f"ebg2_{i}", p["ebg2"][i])
        buf = put(buf, f"ewl1_{i}", p["ewl1"][i]); buf = put(buf, f"ebl1_{i}", p["ebl1"][i])
        buf = put(buf, f"ewl2_{i}", p["ewl2"][i]); buf = put(buf, f"ebl2_{i}", p["ebl2"][i])
    buf = put(buf, "wl3", p["wl3"]); buf = put(buf, "bl3", p["bl3"])
    return buf


# ------------------------- Pallas kernel -------------------------
def _make_kernel(b, n):
    bn = b * n

    def kernel(x_ref, m_ref, wp_ref, out_ref):
        def W(name):
            off, rows, cols = LAYOUT[name]
            return wp_ref[off:off + rows, 0:cols]       # static, zero-cost slice

        def dot(a, w):
            return jnp.dot(a, w, preferred_element_type=jnp.float32)

        x = x_ref[...]                                  # (B*N, INPUT_DIM)
        m = m_ref[...]                                  # (B*N, 1)

        # ---- local MLP (fc_l1 / fc_l2 with residual), all B*N rows at once
        h = _lrelu(dot(x, W("wl1")) + W("bl1"))                        # (B*N, HID)
        h = _lrelu(dot(h, W("wl2")) + W("bl2") + h)                    # (B*N, HID)

        # ---- masked pooling helpers; reciprocal computed ONCE (EUP slot)
        msum = m.reshape(b, n, 1).sum(axis=1)                          # (B, 1)
        inv_msum = pl.reciprocal(jnp.maximum(msum, 1.0), approx=True)  # empty-cloud guard

        def pool(hl):                                                  # (B*N,HID) -> (B,HID)
            return (hl * m).reshape(b, n, HID).sum(axis=1)

        # ---- encoder global branch: fc_g1 on cat(z_sum, z_mean), fc_g2
        z = pool(h)                                                    # (B, HID)
        zg = jnp.concatenate([z * SUM_SCALE, z * inv_msum], axis=-1)   # (B, 2*HID)
        xg = _lrelu(dot(zg, W("wg1")) + W("bg1"))                      # (B, HID)
        xg = _lrelu(dot(xg, W("wg2")) + W("bg2"))                      # (B, LATENT)

        # ---- EPiC layers (static unroll)
        for i in range(EQUIV_LAYERS):
            p_ = pool(h)                                               # (B, HID)
            gcat = jnp.concatenate([p_ * inv_msum, p_ * SUM_SCALE, xg], axis=-1)
            g1 = _lrelu(dot(gcat, W(f"ewg1_{i}")) + W(f"ebg1_{i}"))    # (B, HID)
            xg = _lrelu(dot(g1, W(f"ewg2_{i}")) + W(f"ebg2_{i}") + xg) # (B, LATENT)

            # broadcast per-batch global vector onto its N points (tile-aligned reshape)
            xg_pts = jnp.broadcast_to(xg[:, None, :], (b, n, LATENT)).reshape(bn, LATENT)
            lcat = jnp.concatenate([h, xg_pts], axis=-1)               # (B*N, HID+LATENT)
            l1 = _lrelu(dot(lcat, W(f"ewl1_{i}")) + W(f"ebl1_{i}"))    # (B*N, HID)
            h = _lrelu(dot(l1, W(f"ewl2_{i}")) + W(f"ebl2_{i}") + h)   # (B*N, HID)

        # ---- fc_l3 + final masking; single contiguous store
        out = _lrelu(dot(h, W("wl3")) + W("bl3")) * m                  # (B*N, FEATS)
        out_ref[...] = out.astype(out_ref.dtype)

    return kernel


# ------------------------- parameters -------------------------
def make_params(key):
    keys = iter(jax.random.split(key, 32))

    def init(shape, scale=0.1):
        return jax.random.normal(next(keys), shape, jnp.float32) * scale

    p = {}
    p["wl1"] = init((INPUT_DIM, HID));      p["bl1"] = init((1, HID))
    p["wl2"] = init((HID, HID));            p["bl2"] = init((1, HID))
    p["wg1"] = init((2 * HID, HID));        p["bg1"] = init((1, HID))
    p["wg2"] = init((HID, LATENT));         p["bg2"] = init((1, LATENT))
    p["ewg1"] = init((EQUIV_LAYERS, 2 * HID + LATENT, HID))
    p["ebg1"] = init((EQUIV_LAYERS, 1, HID))
    p["ewg2"] = init((EQUIV_LAYERS, HID, LATENT))
    p["ebg2"] = init((EQUIV_LAYERS, 1, LATENT))
    p["ewl1"] = init((EQUIV_LAYERS, HID + LATENT, HID))
    p["ebl1"] = init((EQUIV_LAYERS, 1, HID))
    p["ewl2"] = init((EQUIV_LAYERS, HID, HID))
    p["ebl2"] = init((EQUIV_LAYERS, 1, HID))
    p["wl3"] = init((HID, FEATS));          p["bl3"] = init((1, FEATS))
    return p


# ------------------------- wrapper -------------------------
@jax.jit
def epic_encoder(x_local, mask, params):
    bsz, npts, din = x_local.shape
    assert din == INPUT_DIM

    x2d = x_local.reshape(bsz * npts, din)
    m2d = mask.reshape(bsz * npts, 1)
    wpack = pack_params(params)            # in production: pack once, reuse

    flops = 2 * (
        bsz * npts * (INPUT_DIM * HID + HID * HID + HID * FEATS)
        + bsz * (2 * HID * HID + HID * LATENT)
        + EQUIV_LAYERS * (
            bsz * ((2 * HID + LATENT) * HID + HID * LATENT)
            + bsz * npts * ((HID + LATENT) * HID + HID * HID)
        )
    )
    bytes_accessed = 4 * (x2d.size + m2d.size + wpack.size + bsz * npts * FEATS)

    vmem = pl.BlockSpec(memory_space=pltpu.MemorySpace.VMEM)
    out2d = pl.pallas_call(
        _make_kernel(bsz, npts),
        out_shape=jax.ShapeDtypeStruct((bsz * npts, FEATS), jnp.float32),
        in_specs=[vmem, vmem, vmem],
        out_specs=vmem,
        cost_estimate=pl.CostEstimate(
            flops=flops, transcendentals=bsz, bytes_accessed=bytes_accessed),
    )(x2d, m2d, wpack)
    return out2d.reshape(bsz, npts, FEATS)


# ------------------------- pure-JAX reference -------------------------
def epic_encoder_ref(x_local, mask, p):
    h = _lrelu(x_local @ p["wl1"] + p["bl1"])
    h = _lrelu(h @ p["wl2"] + p["bl2"] + h)
    msum = mask.sum(axis=1)                              # (B, 1)
    z_raw = (h * mask).sum(axis=1)                       # (B, HID)
    z_mean = z_raw / msum
    z_sum = z_raw * SUM_SCALE
    xg = jnp.concatenate([z_sum, z_mean], axis=-1)
    xg = _lrelu(xg @ p["wg1"] + p["bg1"])
    xg = _lrelu(xg @ p["wg2"] + p["bg2"])
    for i in range(EQUIV_LAYERS):
        p_raw = (h * mask).sum(axis=1)
        p_mean = p_raw / msum
        p_sum = p_raw * SUM_SCALE
        pooled = jnp.concatenate([p_mean, p_sum, xg], axis=-1)
        g1 = _lrelu(pooled @ p["ewg1"][i] + p["ebg1"][i])
        xg = _lrelu(g1 @ p["ewg2"][i] + p["ebg2"][i] + xg)
        g2l = jnp.broadcast_to(xg[:, None, :], (h.shape[0], h.shape[1], LATENT))
        lc = jnp.concatenate([h, g2l], axis=-1)
        l1 = _lrelu(lc @ p["ewl1"][i] + p["ebl1"][i])
        h = _lrelu(l1 @ p["ewl2"][i] + p["ebl2"][i] + h)
    return _lrelu(h @ p["wl3"] + p["bl3"]) * mask


# ------------------------- main -------------------------
if __name__ == "__main__":
    key = jax.random.PRNGKey(0)
    kx, kp = jax.random.split(key)

    x_local = jax.random.normal(kx, (B, N, INPUT_DIM), jnp.float32)
    lens = jnp.array([N, N - 3])
    mask = (jnp.arange(N)[None, :] < lens[:, None]).astype(jnp.float32)[..., None]

    params = make_params(kp)

    out = epic_encoder(x_local, mask, params)
    out = jax.block_until_ready(out)

    ref = epic_encoder_ref(x_local, mask, params)
    assert out.shape == (B, N, FEATS)
    # tolerance covers the single approx (EUP) reciprocal used for 1/mask.sum()
    assert jnp.allclose(out, ref, atol=2e-3, rtol=2e-3), "mismatch vs reference"

    print("KERNEL_OK")
</pallas_src>

<mosaic_0001>
module attributes {stable_mosaic.version = 11 : i64} {
  func.func @kernel(%arg0: memref<16x3xf32, #tpu.memory_space<vmem>>, %arg1: memref<16x1xf32, #tpu.memory_space<vmem>>, %arg2: memref<624x32xf32, #tpu.memory_space<vmem>>, %arg3: memref<16x16xf32, #tpu.memory_space<vmem>>) attributes {dimension_semantics = [], scalar_prefetch = 0 : i64, scratch_operands = 0 : i64, tpu.core_type = #tpu.core_type<tc>} {
    %c0 = arith.constant 0 : index
    %c0_0 = arith.constant 0 : index
    %0 = vector.load %arg0[%c0, %c0_0] : memref<16x3xf32, #tpu.memory_space<vmem>>, vector<16x3xf32>
    %c0_1 = arith.constant 0 : index
    %c0_2 = arith.constant 0 : index
    %1 = vector.load %arg1[%c0_1, %c0_2] : memref<16x1xf32, #tpu.memory_space<vmem>>, vector<16x1xf32>
    %c0_3 = arith.constant 0 : index
    %c0_4 = arith.constant 0 : index
    %2 = vector.load %arg2[%c0_3, %c0_4] : memref<624x32xf32, #tpu.memory_space<vmem>>, vector<3x32xf32>
    %cst = arith.constant dense<0.000000e+00> : vector<16x32xf32>
    %3 = tpu.matmul %0, %2, %cst {dimension_numbers = #tpu.dot_dimension_numbers<[1], [0], [0], [1], [0, 0, 1, 1], [], []>} : vector<16x3xf32>, vector<3x32xf32>, vector<16x32xf32> -> vector<16x32xf32>
    %c8 = arith.constant 8 : index
    %c0_5 = arith.constant 0 : index
    %4 = vector.load %arg2[%c8, %c0_5] : memref<624x32xf32, #tpu.memory_space<vmem>>, vector<1x32xf32>
    %5 = vector.broadcast %4 : vector<1x32xf32> to vector<16x32xf32>
    %6 = arith.addf %3, %5 : vector<16x32xf32>
    %cst_6 = arith.constant 0.000000e+00 : f32
    %7 = vector.broadcast %cst_6 : f32 to vector<16x32xf32>
    %8 = arith.cmpf oge, %6, %7 : vector<16x32xf32>
    %cst_7 = arith.constant 0.00999999977 : f32
    %9 = vector.broadcast %cst_7 : f32 to vector<16x32xf32>
    %10 = arith.mulf %9, %6 : vector<16x32xf32>
    %11 = arith.select %8, %6, %10 : vector<16x32xi1>, vector<16x32xf32>
    %c16 = arith.constant 16 : index
    %c0_8 = arith.constant 0 : index
    %12 = vector.load %arg2[%c16, %c0_8] : memref<624x32xf32, #tpu.memory_space<vmem>>, vector<32x32xf32>
    %cst_9 = arith.constant dense<0.000000e+00> : vector<16x32xf32>
    %13 = tpu.matmul %11, %12, %cst_9 {dimension_numbers = #tpu.dot_dimension_numbers<[1], [0], [0], [1], [0, 0, 1, 1], [], []>} : vector<16x32xf32>, vector<32x32xf32>, vector<16x32xf32> -> vector<16x32xf32>
    %c48 = arith.constant 48 : index
    %c0_10 = arith.constant 0 : index
    %14 = vector.load %arg2[%c48, %c0_10] : memref<624x32xf32, #tpu.memory_space<vmem>>, vector<1x32xf32>
    %15 = vector.broadcast %14 : vector<1x32xf32> to vector<16x32xf32>
    %16 = arith.addf %13, %15 : vector<16x32xf32>
    %17 = arith.addf %16, %11 : vector<16x32xf32>
    %cst_11 = arith.constant 0.000000e+00 : f32
    %18 = vector.broadcast %cst_11 : f32 to vector<16x32xf32>
    %19 = arith.cmpf oge, %17, %18 : vector<16x32xf32>
    %cst_12 = arith.constant 0.00999999977 : f32
    %20 = vector.broadcast %cst_12 : f32 to vector<16x32xf32>
    %21 = arith.mulf %20, %17 : vector<16x32xf32>
    %22 = arith.select %19, %17, %21 : vector<16x32xi1>, vector<16x32xf32>
    %23 = vector.shape_cast %1 : vector<16x1xf32> to vector<2x8x1xf32>
    %cst_13 = arith.constant dense<0.000000e+00> : vector<2x1xf32>
    %24 = vector.multi_reduction <add>, %23, %cst_13 [1] : vector<2x8x1xf32> to vector<2x1xf32>
    %cst_14 = arith.constant 1.000000e+00 : f32
    %25 = vector.broadcast %cst_14 : f32 to vector<2x1xf32>
    %26 = arith.maximumf %24, %25 : vector<2x1xf32>
    %27 = tpu.reciprocal %26 {approx = true} : vector<2x1xf32> -> vector<2x1xf32>
    %28 = vector.broadcast %1 : vector<16x1xf32> to vector<16x32xf32>
    %29 = arith.mulf %22, %28 : vector<16x32xf32>
    %30 = vector.shape_cast %29 : vector<16x32xf32> to vector<2x8x32xf32>
    %cst_15 = arith.constant dense<0.000000e+00> : vector<2x32xf32>
    %31 = vector.multi_reduction <add>, %30, %cst_15 [1] : vector<2x8x32xf32> to vector<2x32xf32>
    %cst_16 = arith.constant 0.00999999977 : f32
    %32 = vector.broadcast %cst_16 : f32 to vector<2x32xf32>
    %33 = arith.mulf %31, %32 : vector<2x32xf32>
    %34 = vector.broadcast %27 : vector<2x1xf32> to vector<2x32xf32>
    %35 = arith.mulf %31, %34 : vector<2x32xf32>
    %36 = tpu.concatenate %33, %35 in 1 : vector<2x32xf32>, vector<2x32xf32> -> vector<2x64xf32>
    %c56 = arith.constant 56 : index
    %c0_17 = arith.constant 0 : index
    %37 = vector.load %arg2[%c56, %c0_17] : memref<624x32xf32, #tpu.memory_space<vmem>>, vector<64x32xf32>
    %cst_18 = arith.constant dense<0.000000e+00> : vector<2x32xf32>
    %38 = tpu.matmul %36, %37, %cst_18 {dimension_numbers = #tpu.dot_dimension_numbers<[1], [0], [0], [1], [0, 0, 1, 1], [], []>} : vector<2x64xf32>, vector<64x32xf32>, vector<2x32xf32> -> vector<2x32xf32>
    %c120 = arith.constant 120 : index
    %c0_19 = arith.constant 0 : index
    %39 = vector.load %arg2[%c120, %c0_19] : memref<624x32xf32, #tpu.memory_space<vmem>>, vector<1x32xf32>
    %40 = vector.broadcast %39 : vector<1x32xf32> to vector<2x32xf32>
    %41 = arith.addf %38, %40 : vector<2x32xf32>
    %cst_20 = arith.constant 0.000000e+00 : f32
    %42 = vector.broadcast %cst_20 : f32 to vector<2x32xf32>
    %43 = arith.cmpf oge, %41, %42 : vector<2x32xf32>
    %cst_21 = arith.constant 0.00999999977 : f32
    %44 = vector.broadcast %cst_21 : f32 to vector<2x32xf32>
    %45 = arith.mulf %44, %41 : vector<2x32xf32>
    %46 = arith.select %43, %41, %45 : vector<2x32xi1>, vector<2x32xf32>
    %c128 = arith.constant 128 : index
    %c0_22 = arith.constant 0 : index
    %47 = vector.load %arg2[%c128, %c0_22] : memref<624x32xf32, #tpu.memory_space<vmem>>, vector<32x8xf32>
    %cst_23 = arith.constant dense<0.000000e+00> : vector<2x8xf32>
    %48 = tpu.matmul %46, %47, %cst_23 {dimension_numbers = #tpu.dot_dimension_numbers<[1], [0], [0], [1], [0, 0, 1, 1], [], []>} : vector<2x32xf32>, vector<32x8xf32>, vector<2x8xf32> -> vector<2x8xf32>
    %c160 = arith.constant 160 : index
    %c0_24 = arith.constant 0 : index
    %49 = vector.load %arg2[%c160, %c0_24] : memref<624x32xf32, #tpu.memory_space<vmem>>, vector<1x8xf32>
    %50 = vector.broadcast %49 : vector<1x8xf32> to vector<2x8xf32>
    %51 = arith.addf %48, %50 : vector<2x8xf32>
    %cst_25 = arith.constant 0.000000e+00 : f32
    %52 = vector.broadcast %cst_25 : f32 to vector<2x8xf32>
    %53 = arith.cmpf oge, %51, %52 : vector<2x8xf32>
    %cst_26 = arith.constant 0.00999999977 : f32
    %54 = vector.broadcast %cst_26 : f32 to vector<2x8xf32>
    %55 = arith.mulf %54, %51 : vector<2x8xf32>
    %56 = arith.select %53, %51, %55 : vector<2x8xi1>, vector<2x8xf32>
    %57 = vector.broadcast %1 : vector<16x1xf32> to vector<16x32xf32>
    %58 = arith.mulf %22, %57 : vector<16x32xf32>
    %59 = vector.shape_cast %58 : vector<16x32xf32> to vector<2x8x32xf32>
    %cst_27 = arith.constant dense<0.000000e+00> : vector<2x32xf32>
    %60 = vector.multi_reduction <add>, %59, %cst_27 [1] : vector<2x8x32xf32> to vector<2x32xf32>
    %61 = vector.broadcast %27 : vector<2x1xf32> to vector<2x32xf32>
    %62 = arith.mulf %60, %61 : vector<2x32xf32>
    %cst_28 = arith.constant 0.00999999977 : f32
    %63 = vector.broadcast %cst_28 : f32 to vector<2x32xf32>
    %64 = arith.mulf %60, %63 : vector<2x32xf32>
    %65 = tpu.concatenate %62, %64, %56 in 1 : vector<2x32xf32>, vector<2x32xf32>, vector<2x8xf32> -> vector<2x72xf32>
    %c168 = arith.constant 168 : index
    %c0_29 = arith.constant 0 : index
    %66 = vector.load %arg2[%c168, %c0_29] : memref<624x32xf32, #tpu.memory_space<vmem>>, vector<72x32xf32>
    %cst_30 = arith.constant dense<0.000000e+00> : vector<2x32xf32>
    %67 = tpu.matmul %65, %66, %cst_30 {dimension_numbers = #tpu.dot_dimension_numbers<[1], [0], [0], [1], [0, 0, 1, 1], [], []>} : vector<2x72xf32>, vector<72x32xf32>, vector<2x32xf32> -> vector<2x32xf32>
    %c240 = arith.constant 240 : index
    %c0_31 = arith.constant 0 : index
    %68 = vector.load %arg2[%c240, %c0_31] : memref<624x32xf32, #tpu.memory_space<vmem>>, vector<1x32xf32>
    %69 = vector.broadcast %68 : vector<1x32xf32> to vector<2x32xf32>
    %70 = arith.addf %67, %69 : vector<2x32xf32>
    %cst_32 = arith.constant 0.000000e+00 : f32
    %71 = vector.broadcast %cst_32 : f32 to vector<2x32xf32>
    %72 = arith.cmpf oge, %70, %71 : vector<2x32xf32>
    %cst_33 = arith.constant 0.00999999977 : f32
    %73 = vector.broadcast %cst_33 : f32 to vector<2x32xf32>
    %74 = arith.mulf %73, %70 : vector<2x32xf32>
    %75 = arith.select %72, %70, %74 : vector<2x32xi1>, vector<2x32xf32>
    %c248 = arith.constant 248 : index
    %c0_34 = arith.constant 0 : index
    %76 = vector.load %arg2[%c248, %c0_34] : memref<624x32xf32, #tpu.memory_space<vmem>>, vector<32x8xf32>
    %cst_35 = arith.constant dense<0.000000e+00> : vector<2x8xf32>
    %77 = tpu.matmul %75, %76, %cst_35 {dimension_numbers = #tpu.dot_dimension_numbers<[1], [0], [0], [1], [0, 0, 1, 1], [], []>} : vector<2x32xf32>, vector<32x8xf32>, vector<2x8xf32> -> vector<2x8xf32>
    %c280 = arith.constant 280 : index
    %c0_36 = arith.constant 0 : index
    %78 = vector.load %arg2[%c280, %c0_36] : memref<624x32xf32, #tpu.memory_space<vmem>>, vector<1x8xf32>
    %79 = vector.broadcast %78 : vector<1x8xf32> to vector<2x8xf32>
    %80 = arith.addf %77, %79 : vector<2x8xf32>
    %81 = arith.addf %80, %56 : vector<2x8xf32>
    %cst_37 = arith.constant 0.000000e+00 : f32
    %82 = vector.broadcast %cst_37 : f32 to vector<2x8xf32>
    %83 = arith.cmpf oge, %81, %82 : vector<2x8xf32>
    %cst_38 = arith.constant 0.00999999977 : f32
    %84 = vector.broadcast %cst_38 : f32 to vector<2x8xf32>
    %85 = arith.mulf %84, %81 : vector<2x8xf32>
    %86 = arith.select %83, %81, %85 : vector<2x8xi1>, vector<2x8xf32>
    %87 = vector.shape_cast %86 : vector<2x8xf32> to vector<2x1x8xf32>
    %88 = vector.shape_cast %87 : vector<2x1x8xf32> to vector<2x1x8xf32>
    %89 = vector.broadcast %88 : vector<2x1x8xf32> to vector<2x8x8xf32>
    %90 = vector.shape_cast %89 : vector<2x8x8xf32> to vector<16x8xf32>
    %91 = tpu.concatenate %22, %90 in 1 : vector<16x32xf32>, vector<16x8xf32> -> vector<16x40xf32>
    %c288 = arith.constant 288 : index
    %c0_39 = arith.constant 0 : index
    %92 = vector.load %arg2[%c288, %c0_39] : memref<624x32xf32, #tpu.memory_space<vmem>>, vector<40x32xf32>
    %cst_40 = arith.constant dense<0.000000e+00> : vector<16x32xf32>
    %93 = tpu.matmul %91, %92, %cst_40 {dimension_numbers = #tpu.dot_dimension_numbers<[1], [0], [0], [1], [0, 0, 1, 1], [], []>} : vector<16x40xf32>, vector<40x32xf32>, vector<16x32xf32> -> vector<16x32xf32>
    %c328 = arith.constant 328 : index
    %c0_41 = arith.constant 0 : index
    %94 = vector.load %arg2[%c328, %c0_41] : memref<624x32xf32, #tpu.memory_space<vmem>>, vector<1x32xf32>
    %95 = vector.broadcast %94 : vector<1x32xf32> to vector<16x32xf32>
    %96 = arith.addf %93, %95 : vector<16x32xf32>
    %cst_42 = arith.constant 0.000000e+00 : f32
    %97 = vector.broadcast %cst_42 : f32 to vector<16x32xf32>
    %98 = arith.cmpf oge, %96, %97 : vector<16x32xf32>
    %cst_43 = arith.constant 0.00999999977 : f32
    %99 = vector.broadcast %cst_43 : f32 to vector<16x32xf32>
    %100 = arith.mulf %99, %96 : vector<16x32xf32>
    %101 = arith.select %98, %96, %100 : vector<16x32xi1>, vector<16x32xf32>
    %c336 = arith.constant 336 : index
    %c0_44 = arith.constant 0 : index
    %102 = vector.load %arg2[%c336, %c0_44] : memref<624x32xf32, #tpu.memory_space<vmem>>, vector<32x32xf32>
    %cst_45 = arith.constant dense<0.000000e+00> : vector<16x32xf32>
    %103 = tpu.matmul %101, %102, %cst_45 {dimension_numbers = #tpu.dot_dimension_numbers<[1], [0], [0], [1], [0, 0, 1, 1], [], []>} : vector<16x32xf32>, vector<32x32xf32>, vector<16x32xf32> -> vector<16x32xf32>
    %c368 = arith.constant 368 : index
    %c0_46 = arith.constant 0 : index
    %104 = vector.load %arg2[%c368, %c0_46] : memref<624x32xf32, #tpu.memory_space<vmem>>, vector<1x32xf32>
    %105 = vector.broadcast %104 : vector<1x32xf32> to vector<16x32xf32>
    %106 = arith.addf %103, %105 : vector<16x32xf32>
    %107 = arith.addf %106, %22 : vector<16x32xf32>
    %cst_47 = arith.constant 0.000000e+00 : f32
    %108 = vector.broadcast %cst_47 : f32 to vector<16x32xf32>
    %109 = arith.cmpf oge, %107, %108 : vector<16x32xf32>
    %cst_48 = arith.constant 0.00999999977 : f32
    %110 = vector.broadcast %cst_48 : f32 to vector<16x32xf32>
    %111 = arith.mulf %110, %107 : vector<16x32xf32>
    %112 = arith.select %109, %107, %111 : vector<16x32xi1>, vector<16x32xf32>
    %113 = vector.broadcast %1 : vector<16x1xf32> to vector<16x32xf32>
    %114 = arith.mulf %112, %113 : vector<16x32xf32>
    %115 = vector.shape_cast %114 : vector<16x32xf32> to vector<2x8x32xf32>
    %cst_49 = arith.constant dense<0.000000e+00> : vector<2x32xf32>
    %116 = vector.multi_reduction <add>, %115, %cst_49 [1] : vector<2x8x32xf32> to vector<2x32xf32>
    %117 = vector.broadcast %27 : vector<2x1xf32> to vector<2x32xf32>
    %118 = arith.mulf %116, %117 : vector<2x32xf32>
    %cst_50 = arith.constant 0.00999999977 : f32
    %119 = vector.broadcast %cst_50 : f32 to vector<2x32xf32>
    %120 = arith.mulf %116, %119 : vector<2x32xf32>
    %121 = tpu.concatenate %118, %120, %86 in 1 : vector<2x32xf32>, vector<2x32xf32>, vector<2x8xf32> -> vector<2x72xf32>
    %c376 = arith.constant 376 : index
    %c0_51 = arith.constant 0 : index
    %122 = vector.load %arg2[%c376, %c0_51] : memref<624x32xf32, #tpu.memory_space<vmem>>, vector<72x32xf32>
    %cst_52 = arith.constant dense<0.000000e+00> : vector<2x32xf32>
    %123 = tpu.matmul %121, %122, %cst_52 {dimension_numbers = #tpu.dot_dimension_numbers<[1], [0], [0], [1], [0, 0, 1, 1], [], []>} : vector<2x72xf32>, vector<72x32xf32>, vector<2x32xf32> -> vector<2x32xf32>
    %c448 = arith.constant 448 : index
    %c0_53 = arith.constant 0 : index
    %124 = vector.load %arg2[%c448, %c0_53] : memref<624x32xf32, #tpu.memory_space<vmem>>, vector<1x32xf32>
    %125 = vector.broadcast %124 : vector<1x32xf32> to vector<2x32xf32>
    %126 = arith.addf %123, %125 : vector<2x32xf32>
    %cst_54 = arith.constant 0.000000e+00 : f32
    %127 = vector.broadcast %cst_54 : f32 to vector<2x32xf32>
    %128 = arith.cmpf oge, %126, %127 : vector<2x32xf32>
    %cst_55 = arith.constant 0.00999999977 : f32
    %129 = vector.broadcast %cst_55 : f32 to vector<2x32xf32>
    %130 = arith.mulf %129, %126 : vector<2x32xf32>
    %131 = arith.select %128, %126, %130 : vector<2x32xi1>, vector<2x32xf32>
    %c456 = arith.constant 456 : index
    %c0_56 = arith.constant 0 : index
    %132 = vector.load %arg2[%c456, %c0_56] : memref<624x32xf32, #tpu.memory_space<vmem>>, vector<32x8xf32>
    %cst_57 = arith.constant dense<0.000000e+00> : vector<2x8xf32>
    %133 = tpu.matmul %131, %132, %cst_57 {dimension_numbers = #tpu.dot_dimension_numbers<[1], [0], [0], [1], [0, 0, 1, 1], [], []>} : vector<2x32xf32>, vector<32x8xf32>, vector<2x8xf32> -> vector<2x8xf32>
    %c488 = arith.constant 488 : index
    %c0_58 = arith.constant 0 : index
    %134 = vector.load %arg2[%c488, %c0_58] : memref<624x32xf32, #tpu.memory_space<vmem>>, vector<1x8xf32>
    %135 = vector.broadcast %134 : vector<1x8xf32> to vector<2x8xf32>
    %136 = arith.addf %133, %135 : vector<2x8xf32>
    %137 = arith.addf %136, %86 : vector<2x8xf32>
    %cst_59 = arith.constant 0.000000e+00 : f32
    %138 = vector.broadcast %cst_59 : f32 to vector<2x8xf32>
    %139 = arith.cmpf oge, %137, %138 : vector<2x8xf32>
    %cst_60 = arith.constant 0.00999999977 : f32
    %140 = vector.broadcast %cst_60 : f32 to vector<2x8xf32>
    %141 = arith.mulf %140, %137 : vector<2x8xf32>
    %142 = arith.select %139, %137, %141 : vector<2x8xi1>, vector<2x8xf32>
    %143 = vector.shape_cast %142 : vector<2x8xf32> to vector<2x1x8xf32>
    %144 = vector.shape_cast %143 : vector<2x1x8xf32> to vector<2x1x8xf32>
    %145 = vector.broadcast %144 : vector<2x1x8xf32> to vector<2x8x8xf32>
    %146 = vector.shape_cast %145 : vector<2x8x8xf32> to vector<16x8xf32>
    %147 = tpu.concatenate %112, %146 in 1 : vector<16x32xf32>, vector<16x8xf32> -> vector<16x40xf32>
    %c496 = arith.constant 496 : index
    %c0_61 = arith.constant 0 : index
    %148 = vector.load %arg2[%c496, %c0_61] : memref<624x32xf32, #tpu.memory_space<vmem>>, vector<40x32xf32>
    %cst_62 = arith.constant dense<0.000000e+00> : vector<16x32xf32>
    %149 = tpu.matmul %147, %148, %cst_62 {dimension_numbers = #tpu.dot_dimension_numbers<[1], [0], [0], [1], [0, 0, 1, 1], [], []>} : vector<16x40xf32>, vector<40x32xf32>, vector<16x32xf32> -> vector<16x32xf32>
    %c536 = arith.constant 536 : index
    %c0_63 = arith.constant 0 : index
    %150 = vector.load %arg2[%c536, %c0_63] : memref<624x32xf32, #tpu.memory_space<vmem>>, vector<1x32xf32>
    %151 = vector.broadcast %150 : vector<1x32xf32> to vector<16x32xf32>
    %152 = arith.addf %149, %151 : vector<16x32xf32>
    %cst_64 = arith.constant 0.000000e+00 : f32
    %153 = vector.broadcast %cst_64 : f32 to vector<16x32xf32>
    %154 = arith.cmpf oge, %152, %153 : vector<16x32xf32>
    %cst_65 = arith.constant 0.00999999977 : f32
    %155 = vector.broadcast %cst_65 : f32 to vector<16x32xf32>
    %156 = arith.mulf %155, %152 : vector<16x32xf32>
    %157 = arith.select %154, %152, %156 : vector<16x32xi1>, vector<16x32xf32>
    %c544 = arith.constant 544 : index
    %c0_66 = arith.constant 0 : index
    %158 = vector.load %arg2[%c544, %c0_66] : memref<624x32xf32, #tpu.memory_space<vmem>>, vector<32x32xf32>
    %cst_67 = arith.constant dense<0.000000e+00> : vector<16x32xf32>
    %159 = tpu.matmul %157, %158, %cst_67 {dimension_numbers = #tpu.dot_dimension_numbers<[1], [0], [0], [1], [0, 0, 1, 1], [], []>} : vector<16x32xf32>, vector<32x32xf32>, vector<16x32xf32> -> vector<16x32xf32>
    %c576 = arith.constant 576 : index
    %c0_68 = arith.constant 0 : index
    %160 = vector.load %arg2[%c576, %c0_68] : memref<624x32xf32, #tpu.memory_space<vmem>>, vector<1x32xf32>
    %161 = vector.broadcast %160 : vector<1x32xf32> to vector<16x32xf32>
    %162 = arith.addf %159, %161 : vector<16x32xf32>
    %163 = arith.addf %162, %112 : vector<16x32xf32>
    %cst_69 = arith.constant 0.000000e+00 : f32
    %164 = vector.broadcast %cst_69 : f32 to vector<16x32xf32>
    %165 = arith.cmpf oge, %163, %164 : vector<16x32xf32>
    %cst_70 = arith.constant 0.00999999977 : f32
    %166 = vector.broadcast %cst_70 : f32 to vector<16x32xf32>
    %167 = arith.mulf %166, %163 : vector<16x32xf32>
    %168 = arith.select %165, %163, %167 : vector<16x32xi1>, vector<16x32xf32>
    %c584 = arith.constant 584 : index
    %c0_71 = arith.constant 0 : index
    %169 = vector.load %arg2[%c584, %c0_71] : memref<624x32xf32, #tpu.memory_space<vmem>>, vector<32x16xf32>
    %cst_72 = arith.constant dense<0.000000e+00> : vector<16x16xf32>
    %170 = tpu.matmul %168, %169, %cst_72 {dimension_numbers = #tpu.dot_dimension_numbers<[1], [0], [0], [1], [0, 0, 1, 1], [], []>} : vector<16x32xf32>, vector<32x16xf32>, vector<16x16xf32> -> vector<16x16xf32>
    %c616 = arith.constant 616 : index
    %c0_73 = arith.constant 0 : index
    %171 = vector.load %arg2[%c616, %c0_73] : memref<624x32xf32, #tpu.memory_space<vmem>>, vector<1x16xf32>
    %172 = vector.broadcast %171 : vector<1x16xf32> to vector<16x16xf32>
    %173 = arith.addf %170, %172 : vector<16x16xf32>
    %cst_74 = arith.constant 0.000000e+00 : f32
    %174 = vector.broadcast %cst_74 : f32 to vector<16x16xf32>
    %175 = arith.cmpf oge, %173, %174 : vector<16x16xf32>
    %cst_75 = arith.constant 0.00999999977 : f32
    %176 = vector.broadcast %cst_75 : f32 to vector<16x16xf32>
    %177 = arith.mulf %176, %173 : vector<16x16xf32>
    %178 = arith.select %175, %173, %177 : vector<16x16xi1>, vector<16x16xf32>
    %179 = vector.broadcast %1 : vector<16x1xf32> to vector<16x16xf32>
    %180 = arith.mulf %178, %179 : vector<16x16xf32>
    %c0_76 = arith.constant 0 : index
    %c0_77 = arith.constant 0 : index
    %181 = vector.load %arg3[%c0_76, %c0_77] : memref<16x16xf32, #tpu.memory_space<vmem>>, vector<16x16xf32>
    tpu.vector_store %arg3[%c0_76, %c0_77], %180 {strides = array<i32>} : memref<16x16xf32, #tpu.memory_space<vmem>>, vector<16x16xf32>,
    return
  }
}

</mosaic_0001>

<bundles_post_ra>
// kernel: epic_encoder.1
= control target key start
LH: loop header
LB: loop body
LE: loop exit
PB: predicated region body
PF: predicated region fallthrough
CT: control target
= control target key end

     0   :  { %vm32_vm0 = vcmask 1042432   ;;  %vm25_vm1 = vcmask 23552   ;;  %s2301_s0 = inlined_call_operand.vmem [shape: f32[16,3], index: 0, kind: input, shape index: {}]   ;;  %s2302_s1 = inlined_call_operand.vmem [shape: f32[16,1], index: 1, kind: input, shape index: {}]   ;;  %s2303_s2 = inlined_call_operand.vmem [shape: f32[624,32], index: 2, kind: input, shape index: {}]   ;;  %s2304_s3 = inlined_call_operand.hbm [shape: f32[16,16], index: 3, kind: output, shape index: {}]  }
   0x1   :  { %v19_v0 = vld [vmem:[%s2303_s2] sm:$0x7]  ;;  %v16_v2 = vld [vmem:[%s2301_s0 + $0x8] sm:$0xff] }
   0x2   :  { %v15_v1 = vld [vmem:[%s2301_s0] sm:$0xff]  ;;  %1565 = vmatprep.subr.msk.mxu0 %vm32_vm0, %v19_v0 }
   0x3   :  { %1567 = vmatprep.mubr.msk.f32.mxu0 %vm25_vm1, %v15_v1 }
   0x4   :  { %8 = vsyncpa [#allocation3], 0  ;;  %1566 = vmatpush3.msk.msra.mxu0 %vm32_vm0, %v19_v0  ;;  %v117_v3 = vld [vmem:[%s2303_s2 + $0x10] sm:$0xff]  ;;  %v118_v4 = vld [vmem:[%s2303_s2 + $0x18] sm:$0xff]  ;;  %vm216_vm2 = vcmask 7168   ;;  %v1876_v11 = vmov 0  }
   0x5   :  { %1568 = vmatmul.mubr.msk.f32.vlgmr.msra.gmra.mrb[0].mxu0 %vm25_vm1, %v16_v2  ;;  %v1734_v5 = vpack.c.bf16 %v118_v4, %v117_v3  ;;  %v119_v6 = vld [vmem:[%s2303_s2 + $0x20] sm:$0xff]  ;;  %v120_v7 = vld [vmem:[%s2303_s2 + $0x28] sm:$0xff]  ;;  %1846 = vset.pattern.permute.xlu0 %v1876_v11  ;;  %vm126_vm5 = vcmask 261120   ;;  %v287_v39 = vld [vmem:[%s2303_s2 + $0x38] sm:$0xff]  ;;  %v1877_v42 = vmov 0.0|0.0   ;;  %vm1878_vm8 = vmmov 0  }
   0x6   :  { %v1738_v8 = vpack.c.bf16 %v120_v7, %v119_v6  ;;  %v17_v9 = vld [vmem:[%s2302_s1] sm:$0xff]  ;;  %v18_v10 = vld [vmem:[%s2302_s1 + $0x8] sm:$0xff]  ;;  %1847 = vset.pattern.permute.xlu1 %v1876_v11  ;;  %1742 = vmatprep.subr.bf16.mxu0 %v1877_v42  ;;  %v290_v44 = vld [vmem:[%s2303_s2 + $0x50] sm:$0xff]  ;;  %vm277_vm9 = vcmask 1041409   ;;  %s1880_s24 = smov 32   ;;  %vm300_vm10 = vcmask 523264  }
   0x7   :  { %1735 = vmatprep.subr.bf16.mxu1 %v1734_v5  ;;  %v217_v12 = vsel %vm216_vm2, %v17_v9, 0.0  ;;  %v224_v13 = vsel %vm216_vm2, %v18_v10, 0.0  ;;  %237 = vperm.xlu0 %1846, %v17_v9   ;;  %v1446_v30 = vld [vmem:[%s2303_s2 + $0x8] ss:$0 sm:$0xff]  ;;  %v288_v40 = vld [vmem:[%s2303_s2 + $0x40] sm:$0xff]  ;;  %v291_v46 = vld [vmem:[%s2303_s2 + $0x58] sm:$0xff] }
   0x8   :  { %1737 = vmatpush3.bf16.msra.mxu1 %v1734_v5  ;;  %v218_v14 = vrot.slane %v217_v12, 4  ;;  %v225_v15 = vrot.slane %v224_v13, 4  ;;  %v289_v41 = vld [vmem:[%s2303_s2 + $0x48] sm:$0xff]  ;;  %v1743_v43 = vpack.c.bf16 %v288_v40, %v287_v39  ;;  %v292_v47 = vld [vmem:[%s2303_s2 + $0x60] sm:$0xff]  ;;  %v294_v50 = vld [vmem:[%s2303_s2 + $0x70] sm:$0xff]  ;;  %v1879_v9 = vmov 0.0  }
   0x9   :  { %1739 = vmatprep.subr.bf16.mxu1 %v1738_v8  ;;  %v1746_v45 = vpack.c.bf16 %v290_v44, %v289_v41  ;;  %v1749_v48 = vpack.c.bf16 %v292_v47, %v291_v46  ;;  %v293_v49 = vld [vmem:[%s2303_s2 + $0x68] sm:$0xff]  ;;  %v1450_v52 = vld [vmem:[%s2303_s2 + $0x30] ss:$0 sm:$0xff]  ;;  %1597 = vmatprep.mubr.msk.f32.mxu0 %vm1878_vm8, %v1879_v9  ;;  %v377_v11 = vld [vmem:[%s2303_s2 + $0x80] sm:$0xff]  ;;  %s1881_s27 = smov 64   ;;  %vm486_vm13 = vcmask 588800  }
   0xa   :  { %v219_v16 = vadd.f32 %v218_v14, %v217_v12  ;;  %v226_v17 = vadd.f32 %v225_v15, %v224_v13  ;;  %1744 = vmatpush3.bf16.msra.mxu0 %v1743_v43  ;;  %v1752_v51 = vpack.c.bf16 %v294_v50, %v293_v49  ;;  %v378_v12 = vld [vmem:[%s2303_s2 + $0x88] sm:$0xff]  ;;  %v473_v41 = vld [vmem:[%s2303_s2 + $0xb0] sm:$0xff]  ;;  %v474_v43 = vld [vmem:[%s2303_s2 + $0xb8] sm:$0xff]  ;;  %vm698_vm0 = vcmask 326656   ;;  %s1883_s7 = smov [#allocation2]  }
   0xb   :  { %242 = vperm.xlu0 %1846, %v18_v10   ;;  %1745 = vmatprep.subr.bf16.mxu0 %v1877_v42  ;;  %v1755_v15 = vpack.c.bf16 %v378_v12, %v377_v11  ;;  %v472_v40 = vld [vmem:[%s2303_s2 + $0xa8] sm:$0xff]  ;;  %v478_v50 = vld [vmem:[%s2303_s2 + $0xd8] sm:$0xff]  ;;  %v1457_v11 = vld [vmem:[%s2303_s2 + $0xf0] ss:$0 sm:$0xff]  ;;  %s1435_s8 = sshll.u32 %s1883_s7, 4  ;;  %s1436_s8 = int_to_ptr.vmem [resolvable:$true] %s1435_s8 }
   0xc   :  { %1741 = vmatpush3.bf16.msra.mxu1 %v1738_v8  ;;  %v220_v18 = vrot.slane %v219_v16, 2  ;;  %v227_v19 = vrot.slane %v226_v17, 2  ;;  %v1761_v44 = vpack.c.bf16 %v473_v41, %v472_v40  ;;  %v476_v47 = vld [vmem:[%s2303_s2 + $0xc8] sm:$0xff]  ;;  %p1857_p1 = scmp.lt.s32.totalorder %s1436_s8, %s1436_s8 }
   0xd   :  { %1754 = vmatprep.subr.bf16.mxu1 %v1877_v42 }
   0xe   :  { %v221_v20 = vadd.f32 %v220_v18, %v219_v16  ;;  %v228_v21 = vadd.f32 %v227_v19, %v226_v17  ;;  %1747 = vmatpush3.bf16.msra.mxu0 %v1746_v45  ;;  %v475_v45 = vld [vmem:[%s2303_s2 + $0xc0] sm:$0xff] }
   0xf   :  { %1748 = vmatprep.subr.bf16.mxu0 %v1877_v42  ;;  %v1764_v46 = vpack.c.bf16 %v475_v45, %v474_v43 }
  0x10   :  { %v222_v22 = vrot.slane %v221_v20, 1  ;;  %v229_v23 = vrot.slane %v228_v21, 1 }
  0x12   :  { %v223_v24 = vadd.f32 %v222_v22, %v221_v20  ;;  %v230_v25 = vadd.f32 %v229_v23, %v228_v21  ;;  %1750 = vmatpush3.bf16.msra.mxu0 %v1749_v48  ;;  %v477_v48 = vld [vmem:[%s2303_s2 + $0xd0] sm:$0xff] }
  0x13   :  { %1751 = vmatprep.subr.bf16.mxu0 %v1877_v42  ;;  %v1767_v49 = vpack.c.bf16 %v477_v48, %v476_v47 }
  0x14   :  { %v231_v26 = vmax.f32 %v223_v24, 1.0  ;;  %v232_v27 = vmax.f32 %v230_v25, 1.0 }
  0x16   :  { %1848 = vrcp.f32 %v231_v26  ;;  %1753 = vmatpush3.bf16.msra.mxu0 %v1752_v51  ;;  %v479_v51 = vld [vmem:[%s2303_s2 + $0xe0] sm:$0xff] }
  0x17   :  { %1850 = vrcp.f32 %v232_v27  ;;  %1772 = vmatprep.subr.bf16.mxu0 %v1877_v42 }
  0x20   :  { %v1849_v28 = vpop.eup %1848 }
  0x21   :  { %265 = vperm.xlu1 %1847, %v1849_v28   ;;  %v1851_v29 = vpop.eup %1850 }
  0x25   :  { %270 = vperm.xlu1 %1847, %v1851_v29  }
  0x86   :  { %v1971_v54 = vpop.permute.xlu0 %237 }
  0x8a   :  { %v1973_v62 = vpop.permute.xlu0 %242 }
  0xa0   :  { %v1995_v13 = vpop.permute.xlu1 %265 }
  0xa4   :  { %v1998_v22 = vpop.permute.xlu1 %270 }
  0xd8   :  { %v1569_v31 = vpop.f32.mrb[0].mxu0 }
  0xd9   :  { %v108_v32 = vadd.f32 %v1569_v31, %v1446_v30  ;;  %v102_v33 = vpop.f32.mrb[1].mxu0  ;;  %v379_v31 = vld [vmem:[%s2303_s2 + $0x90] sm:$0xff] }
  0xda   :  { %v103_v34 = vadd.f32 %v1446_v30, %v102_v33 }
  0xdb   :  { %v114_v35 = vmul.f32 0.01, %v108_v32  ;;  %vm112_vm3 = vcmp.ge.f32.partialorder %v108_v32, 0.0 }
  0xdc   :  { %vm111_vm4 = vcmp.ge.f32.partialorder %v103_v34, 0.0  ;;  %v113_v36 = vmul.f32 0.01, %v103_v34 }
  0xdd   :  { %v116_v38 = vsel %vm112_vm3, %v108_v32, %v114_v35  ;;  %v380_v32 = vld [vmem:[%s2303_s2 + $0x98] sm:$0xff] }
  0xde   :  { %v115_v37 = vsel %vm111_vm4, %v103_v34, %v113_v36  ;;  %v1758_v33 = vpack.c.bf16 %v380_v32, %v379_v31  ;;  %v1453_v34 = vld [vmem:[%s2303_s2 + $0x78] ss:$0 sm:$0xff] }
  0xdf   :  { %1578 = vmatprep.mubr.msk.f32.mxu1 %vm126_vm5, %v115_v37 }
  0xe0   :  { %1579 = vmatmul.mubr.msk.f32.vlgmr.msra.gmra.mrb[0].mxu1 %vm126_vm5, %v116_v38 }
  0xe1   :  { %1608 = vmatprep.mubr.msk.f32.mxu1 %vm1878_vm8, %v1879_v9  ;;  %1756 = vmatpush3.bf16.msra.mxu1 %v1755_v15 }
  0xe2   :  { %1757 = vmatprep.subr.bf16.mxu1 %v1877_v42 }
  0xe5   :  { %1759 = vmatpush3.bf16.msra.mxu1 %v1758_v33 }
  0xe6   :  { %1760 = vmatprep.subr.bf16.mxu1 %v1877_v42 }
 0x1b3   :  { %v1580_v53 = vpop.f32.mrb[0].mxu1 }
 0x1b4   :  { %v205_v55 = vadd.f32 %v1580_v53, %v1450_v52  ;;  %v199_v56 = vpop.f32.mrb[1].mxu1  ;;  %v480_v53 = vld [vmem:[%s2303_s2 + $0xe8] sm:$0xff] }
 0x1b5   :  { %v200_v57 = vadd.f32 %v1450_v52, %v199_v56  ;;  %v1770_v52 = vpack.c.bf16 %v479_v51, %v478_v50  ;;  %v564_v56 = vld [vmem:[%s2303_s2 + $0x100] sm:$0xff]  ;;  %v786_v51 = vld [vmem:[%s2303_s2 + $0x150] sm:$0xff] }
 0x1b6   :  { %v209_v58 = vadd.f32 %v205_v55, %v116_v38  ;;  %v563_v55 = vld [vmem:[%s2303_s2 + $0xf8] sm:$0xff] }
 0x1b7   :  { %v208_v59 = vadd.f32 %v200_v57, %v115_v37  ;;  %v1773_v57 = vpack.c.bf16 %v564_v56, %v563_v55  ;;  %v788_v55 = vld [vmem:[%s2303_s2 + $0x160] sm:$0xff]  ;;  %v789_v56 = vld [vmem:[%s2303_s2 + $0x168] sm:$0xff] }
 0x1b8   :  { %vm211_vm6 = vcmp.ge.f32.partialorder %v209_v58, 0.0  ;;  %v213_v60 = vmul.f32 0.01, %v209_v58 }
 0x1b9   :  { %vm210_vm7 = vcmp.ge.f32.partialorder %v208_v59, 0.0  ;;  %v212_v61 = vmul.f32 0.01, %v208_v59 }
 0x1ba   :  { %v1975_v63 = vsel %vm211_vm6, %v209_v58, %v213_v60  ;;  %v1455_v58 = vld [vmem:[%s2303_s2 + $0xa0] ss:$0 sm:$0xff] }
 0x1bb   :  { %v1977_v0 = vsel %vm210_vm7, %v208_v59, %v212_v61  ;;  %v246_v1 = vmul.f32 %v1973_v62, %v1975_v63 }
 0x1bc   :  { %v245_v2 = vmul.f32 %v1971_v54, %v1977_v0 }
 0x1bd   :  { %v254_v3 = vsel %vm126_vm5, %v246_v1, 0.0 }
 0x1be   :  { %v255_v4 = vrot.slane %v254_v3, 4  ;;  %v247_v5 = vsel %vm126_vm5, %v245_v2, 0.0 }
 0x1bf   :  { %v248_v6 = vrot.slane %v247_v5, 4 }
 0x1c0   :  { %v256_v7 = vadd.f32 %v255_v4, %v254_v3 }
 0x1c1   :  { %v249_v8 = vadd.f32 %v248_v6, %v247_v5 }
 0x1c2   :  { %v257_v10 = vrot.slane %v256_v7, 2 }
 0x1c3   :  { %v250_v14 = vrot.slane %v249_v8, 2 }
 0x1c4   :  { %v258_v16 = vadd.f32 %v257_v10, %v256_v7  ;;  %v565_v7 = vld [vmem:[%s2303_s2 + $0x108] sm:$0xff] }
 0x1c5   :  { %v251_v17 = vadd.f32 %v250_v14, %v249_v8  ;;  %v566_v8 = vld [vmem:[%s2303_s2 + $0x110] sm:$0xff] }
 0x1c6   :  { %v259_v18 = vrot.slane %v258_v16, 1  ;;  %v1776_v10 = vpack.c.bf16 %v566_v8, %v565_v7  ;;  %v920_v7 = vld [vmem:[%s2303_s2 + $0x180] sm:$0xff]  ;;  %v921_v8 = vld [vmem:[%s2303_s2 + $0x188] sm:$0xff] }
 0x1c7   :  { %v252_v19 = vrot.slane %v251_v17, 1 }
 0x1c8   :  { %v260_v20 = vadd.f32 %v259_v18, %v258_v16  ;;  %v688_v18 = vld [vmem:[%s2303_s2 + $0x120] sm:$0xff] }
 0x1c9   :  { %v253_v21 = vadd.f32 %v252_v19, %v251_v17  ;;  %v689_v19 = vld [vmem:[%s2303_s2 + $0x128] sm:$0xff] }
 0x1ca   :  { %v262_v23 = vmul.f32 0.01, %v260_v20  ;;  %v274_v24 = vmul.f32 %v1998_v22, %v260_v20  ;;  %v690_v20 = vld [vmem:[%s2303_s2 + $0x130] sm:$0xff] }
 0x1cb   :  { %v261_v25 = vmul.f32 0.01, %v253_v21  ;;  %v273_v26 = vmul.f32 %v1995_v13, %v253_v21  ;;  %v1778_v21 = vpack.c.bf16 %v689_v19, %v688_v18  ;;  %v926_v18 = vld [vmem:[%s2303_s2 + $0x1b0] sm:$0xff] }
 0x1cd   :  { %v2003_v27 = vsel %vm277_vm9, %v274_v24, %v273_v26  ;;  %v278_v28 = vsel %vm277_vm9, %v262_v23, %v261_v25  ;;  %v691_v23 = vld [vmem:[%s2303_s2 + $0x138] sm:$0xff]  ;;  %v1882_v25 = vmov 1966171168  }
 0x1ce   :  { %283 = vrot.lane.b32.xlu0 %v2003_v27, %s1880_s24  ;;  %463 = vrot.lane.b32.xlu1 %v278_v28, %s1880_s24  ;;  %v1782_v24 = vpack.c.bf16 %v691_v23, %v690_v20  ;;  %v651_v26 = vunpack.c.l.s4 %v1882_v25  ;;  %v1464_v20 = vld [vmem:[%s2303_s2 + $0x170] ss:$0 sm:$0xff] }
 0x240   :  { %v284_v29 = vpop.permute.xlu0 %283  ;;  %v464_v3 = vpop.permute.xlu1 %463 }
 0x241   :  { %v286_v30 = vsel %vm126_vm5, %v278_v28, %v284_v29  ;;  %v470_v4 = vsel %vm126_vm5, %v2003_v27, %v464_v3  ;;  %v653_v27 = vlaneseq  ;;  %v1459_v28 = vld [vmem:[%s2303_s2 + $0x118] ss:$0 sm:$0xff] }
 0x242   :  { %1598 = vmatmul.mubr.msk.f32.vlgmr.msra.gmra.mrb[2].mxu0 %vm300_vm10, %v286_v30  ;;  %v652_v30 = vunpack.c.0.s8 %v651_v26 }
 0x243   :  { %1640 = vmatprep.mubr.msk.f32.mxu0 %vm1878_vm8, %v1879_v9  ;;  %1774 = vmatpush3.bf16.msra.mxu0 %v1773_v57  ;;  %v654_v31 = vshrl.u32 %v653_v27, 7  ;;  %v1790_v57 = vpack.c.bf16 %v789_v56, %v788_v55 }
 0x244   :  { %1775 = vmatprep.subr.bf16.mxu0 %v1877_v42 }
 0x245   :  { %v2107_v40 = vsub.s32 0, %v654_v31 }
 0x247   :  { %1777 = vmatpush3.bf16.msra.mxu0 %v1776_v10 }
 0x248   :  { %1779 = vmatprep.subr.bf16.mxu0 %v1778_v21 }
 0x315   :  { %v370_v35 = vpop.f32.mrb[2].mxu0 }
 0x316   :  { %v371_v36 = vadd.f32 %v1453_v34, %v370_v35  ;;  %v1599_v37 = vpop.f32.mrb[3].mxu0  ;;  %v692_v34 = vld [vmem:[%s2303_s2 + $0x140] sm:$0xff] }
 0x318   :  { %vm374_vm11 = vcmp.ge.f32.partialorder %v371_v36, 0.0  ;;  %v375_v38 = vmul.f32 0.01, %v371_v36 }
 0x31a   :  { %v376_v39 = vsel %vm374_vm11, %v371_v36, %v375_v38  ;;  %v2100_v36 = vsub.s32 %v652_v30, %v654_v31 }
 0x31b   :  { %1609 = vmatmul.mubr.msk.f32.vlgmr.msra.gmra.mrb[2].mxu1 %vm126_vm5, %v376_v39 }
 0x31c   :  { %1629 = vmatprep.mubr.msk.f32.mxu1 %vm1878_vm8, %v1879_v9  ;;  %1762 = vmatpush3.bf16.msra.mxu1 %v1761_v44 }
 0x31d   :  { %1763 = vmatprep.subr.bf16.mxu1 %v1877_v42 }
 0x320   :  { %1765 = vmatpush3.bf16.msra.mxu1 %v1764_v46 }
 0x321   :  { %1766 = vmatprep.subr.bf16.mxu1 %v1877_v42 }
 0x324   :  { %1768 = vmatpush3.bf16.msra.mxu1 %v1767_v49 }
 0x325   :  { %1769 = vmatprep.subr.bf16.mxu1 %v1877_v42 }
 0x328   :  { %1771 = vmatpush3.bf16.msra.mxu1 %v1770_v52  ;;  %v787_v52 = vld [vmem:[%s2303_s2 + $0x158] sm:$0xff] }
 0x329   :  { %1627 = vmatprep.subr.mxu1 %v1879_v9 }
 0x32c   :  { %1628 = vmatpush3.msra.mxu1 %v480_v53  ;;  %v1786_v53 = vpack.c.bf16 %v787_v52, %v786_v51 }
 0x32e   :  { %1787 = vmatprep.subr.bf16.mxu1 %v1786_v53 }
 0x3ee   :  { %v455_v59 = vpop.f32.mrb[2].mxu1 }
 0x3ef   :  { %v456_v60 = vadd.f32 %v1455_v58, %v455_v59  ;;  %v1610_v61 = vpop.f32.mrb[3].mxu1  ;;  %v1461_v58 = vld [vmem:[%s2303_s2 + $0x148] ss:$0 sm:$0xff] }
 0x3f1   :  { %v460_v1 = vmul.f32 0.01, %v456_v60  ;;  %vm459_vm12 = vcmp.ge.f32.partialorder %v456_v60, 0.0 }
 0x3f3   :  { %v461_v2 = vsel %vm459_vm12, %v456_v60, %v460_v1 }
 0x3f4   :  { %467 = vrot.lane.b32.xlu0 %v461_v2, %s1881_s27 }
 0x466   :  { %v468_v5 = vpop.permute.xlu0 %467 }
 0x467   :  { %v471_v6 = vsel %vm300_vm10, %v470_v4, %v468_v5 }
 0x468   :  { %1630 = vmatmul.mubr.msk.f32.vlgmr.msra.gmra.mrb[4].mxu1 %vm486_vm13, %v471_v6  ;;  %v919_v6 = vld [vmem:[%s2303_s2 + $0x178] sm:$0xff] }
 0x469   :  { %1789 = vmatpush3.bf16.msra.mxu1 %v1786_v53  ;;  %v1795_v10 = vpack.c.bf16 %v920_v7, %v919_v6 }
 0x46a   :  { %1791 = vmatprep.subr.bf16.mxu1 %v1790_v57 }
 0x46d   :  { %1793 = vmatpush3.bf16.msra.mxu1 %v1790_v57 }
 0x46e   :  { %1806 = vmatprep.subr.bf16.mxu1 %v1877_v42 }
 0x53b   :  { %v556_v12 = vpop.f32.mrb[4].mxu1 }
 0x53c   :  { %v557_v14 = vadd.f32 %v1457_v11, %v556_v12  ;;  %v1631_v15 = vpop.f32.mrb[5].mxu1  ;;  %v922_v11 = vld [vmem:[%s2303_s2 + $0x190] sm:$0xff] }
 0x53d   :  { %v1798_v12 = vpack.c.bf16 %v922_v11, %v921_v8  ;;  %v924_v15 = vld [vmem:[%s2303_s2 + $0x1a0] sm:$0xff]  ;;  %v1135_v11 = vld [vmem:[%s2303_s2 + $0x1f8] sm:$0xff] }
 0x53e   :  { %vm560_vm14 = vcmp.ge.f32.partialorder %v557_v14, 0.0  ;;  %v561_v16 = vmul.f32 0.01, %v557_v14 }
 0x540   :  { %v562_v17 = vsel %vm560_vm14, %v557_v14, %v561_v16  ;;  %v923_v14 = vld [vmem:[%s2303_s2 + $0x198] sm:$0xff]  ;;  %vm1427_vm14 = vcmask 130048  }
 0x541   :  { %1641 = vmatmul.mubr.msk.f32.vlgmr.msra.gmra.mrb[4].mxu0 %vm126_vm5, %v562_v17  ;;  %v1801_v16 = vpack.c.bf16 %v924_v15, %v923_v14  ;;  %v925_v17 = vld [vmem:[%s2303_s2 + $0x1a8] sm:$0xff] }
 0x542   :  { %1781 = vmatpush3.bf16.msra.mxu0 %v1778_v21  ;;  %v1804_v19 = vpack.c.bf16 %v926_v18, %v925_v17  ;;  %v1137_v15 = vld [vmem:[%s2303_s2 + $0x208] sm:$0xff] }
 0x543   :  { %1783 = vmatprep.subr.bf16.mxu0 %v1782_v24  ;;  %v1469_v17 = vld [vmem:[%s2303_s2 + $0x1e8] ss:$0 sm:$0xff] }
 0x546   :  { %1785 = vmatpush3.bf16.msra.mxu0 %v1782_v24 }
 0x547   :  { %1651 = vmatprep.subr.mxu0 %v692_v34 }
 0x54a   :  { %1652 = vmatpush3.msra.mxu0 %v692_v34 }
 0x54b   :  { %1794 = vmatprep.subr.bf16.mxu0 %v1877_v42 }
 0x614   :  { %v641_v29 = vpop.f32.mrb[4].mxu0 }
 0x615   :  { %v642_v32 = vadd.f32 %v1459_v28, %v641_v29  ;;  %v1642_v33 = vpop.f32.mrb[5].mxu0 }
 0x617   :  { %v645_v35 = vadd.f32 %v642_v32, %v461_v2 }
 0x619   :  { %vm646_vm15 = vcmp.ge.f32.partialorder %v645_v35, 0.0  ;;  %v647_v37 = vmul.f32 0.01, %v645_v35 }
 0x61b   :  { %v2103_v38 = vsel %vm646_vm15, %v645_v35, %v647_v37 }
 0x61c   :  { %v656_v39 = vrot.slane %v2103_v38, %v2100_v36 }
 0x61e   :  { %v664_v41 = vrot.slane %v656_v39, %v2100_v36  ;;  %v657_v43 = vcombine.high %v656_v39, %v656_v39  ;;  %v927_v39 = vld [vmem:[%s2303_s2 + $0x1b8] sm:$0xff] }
 0x620   :  { %v675_v44 = vrot.slane %v664_v41, %v2107_v40  ;;  %v671_v45 = vrot.slane %v657_v43, %v2100_v36 }
 0x622   :  { %680 = vrot.lane.b32.xlu1 %v675_v44, %s1880_s24  ;;  %v679_v46 = vrot.slane %v671_v45, %v2107_v40  ;;  %v1009_v44 = vld [vmem:[%s2303_s2 + $0x1c8] sm:$0xff]  ;;  %v1010_v45 = vld [vmem:[%s2303_s2 + $0x1d0] sm:$0xff] }
 0x624   :  { %682 = vrot.lane.b32.xlu0 %v679_v46, %s1880_s24 }
 0x628   :  { %914 = vrot.lane.b32.xlu0 %v2103_v38, %s1881_s27 }
 0x694   :  { %v681_v47 = vpop.permute.xlu1 %680 }
 0x695   :  { %v686_v48 = vsel %vm126_vm5, %v1977_v0, %v681_v47  ;;  %v1807_v47 = vpack.c.bf16 %v1010_v45, %v1009_v44 }
 0x696   :  { %1653 = vmatprep.mubr.msk.f32.mxu0 %vm698_vm0, %v686_v48  ;;  %v683_v49 = vpop.permute.xlu0 %682 }
 0x697   :  { %v687_v50 = vsel %vm126_vm5, %v1975_v63, %v683_v49 }
 0x698   :  { %1654 = vmatmul.mubr.msk.f32.vlgmr.msra.gmra.mrb[6].mxu0 %vm698_vm0, %v687_v50 }
 0x699   :  { %1685 = vmatprep.mubr.msk.f32.mxu0 %vm1878_vm8, %v1879_v9  ;;  %1796 = vmatpush3.bf16.msra.mxu0 %v1795_v10  ;;  %v1134_v10 = vld [vmem:[%s2303_s2 + $0x1f0] sm:$0xff] }
 0x69a   :  { %1797 = vmatprep.subr.bf16.mxu0 %v1877_v42  ;;  %v1812_v14 = vpack.c.bf16 %v1135_v11, %v1134_v10 }
 0x69d   :  { %1799 = vmatpush3.bf16.msra.mxu0 %v1798_v12  ;;  %v1136_v12 = vld [vmem:[%s2303_s2 + $0x200] sm:$0xff] }
 0x69e   :  { %1800 = vmatprep.subr.bf16.mxu0 %v1877_v42 }
 0x6a1   :  { %1802 = vmatpush3.bf16.msra.mxu0 %v1801_v16  ;;  %v1816_v16 = vpack.c.bf16 %v1137_v15, %v1136_v12 }
 0x6a2   :  { %1803 = vmatprep.subr.bf16.mxu0 %v1877_v42 }
 0x6a5   :  { %1805 = vmatpush3.bf16.msra.mxu0 %v1804_v19 }
 0x6a6   :  { %1683 = vmatprep.subr.mxu0 %v1879_v9 }
 0x6a9   :  { %1684 = vmatpush3.msra.mxu0 %v927_v39 }
 0x76b   :  { %v1655_v59 = vpop.f32.mrb[6].mxu0 }
 0x76c   :  { %v777_v60 = vadd.f32 %v1655_v59, %v1461_v58  ;;  %v771_v61 = vpop.f32.mrb[7].mxu0 }
 0x76d   :  { %v772_v1 = vadd.f32 %v1461_v58, %v771_v61  ;;  %v915_v61 = vpop.permute.xlu0 %914 }
 0x76e   :  { %v783_v2 = vmul.f32 0.01, %v777_v60  ;;  %vm781_vm1 = vcmp.ge.f32.partialorder %v777_v60, 0.0 }
 0x76f   :  { %vm780_vm2 = vcmp.ge.f32.partialorder %v772_v1, 0.0  ;;  %v782_v3 = vmul.f32 0.01, %v772_v1 }
 0x770   :  { %v785_v5 = vsel %vm781_vm1, %v777_v60, %v783_v2 }
 0x771   :  { %v784_v4 = vsel %vm780_vm2, %v772_v1, %v782_v3  ;;  %v1467_v3 = vld [vmem:[%s2303_s2 + $0x1c0] ss:$0 sm:$0xff] }
 0x772   :  { %1664 = vmatprep.mubr.msk.f32.mxu1 %vm126_vm5, %v784_v4 }
 0x773   :  { %1665 = vmatmul.mubr.msk.f32.vlgmr.msra.gmra.mrb[6].mxu1 %vm126_vm5, %v785_v5 }
 0x774   :  { %1696 = vmatprep.mubr.msk.f32.mxu1 %vm1878_vm8, %v1879_v9  ;;  %1808 = vmatpush3.bf16.msra.mxu1 %v1807_v47 }
 0x775   :  { %1809 = vmatprep.subr.bf16.mxu1 %v1877_v42 }
 0x846   :  { %v1666_v21 = vpop.f32.mrb[6].mxu1 }
 0x847   :  { %v873_v23 = vadd.f32 %v1666_v21, %v1464_v20  ;;  %v867_v24 = vpop.f32.mrb[7].mxu1  ;;  %v1138_v21 = vld [vmem:[%s2303_s2 + $0x210] sm:$0xff] }
 0x848   :  { %v868_v25 = vadd.f32 %v1464_v20, %v867_v24 }
 0x849   :  { %v877_v26 = vadd.f32 %v873_v23, %v1975_v63 }
 0x84a   :  { %v876_v27 = vadd.f32 %v868_v25, %v1977_v0 }
 0x84b   :  { %vm879_vm3 = vcmp.ge.f32.partialorder %v877_v26, 0.0  ;;  %v881_v28 = vmul.f32 0.01, %v877_v26 }
 0x84c   :  { %vm878_vm4 = vcmp.ge.f32.partialorder %v876_v27, 0.0  ;;  %v880_v29 = vmul.f32 0.01, %v876_v27 }
 0x84d   :  { %v2178_v30 = vsel %vm879_vm3, %v877_v26, %v881_v28 }
 0x84e   :  { %v885_v9 = vmul.f32 %v2178_v30, %v1973_v62  ;;  %v2182_v31 = vsel %vm878_vm4, %v876_v27, %v880_v29 }
 0x84f   :  { %v884_v32 = vmul.f32 %v2182_v31, %v1971_v54 }
 0x850   :  { %v893_v33 = vsel %vm126_vm5, %v885_v9, 0.0 }
 0x851   :  { %v894_v34 = vrot.slane %v893_v33, 4  ;;  %v886_v63 = vsel %vm126_vm5, %v884_v32, 0.0 }
 0x852   :  { %v887_v0 = vrot.slane %v886_v63, 4 }
 0x853   :  { %v895_v35 = vadd.f32 %v894_v34, %v893_v33 }
 0x854   :  { %v888_v37 = vadd.f32 %v887_v0, %v886_v63 }
 0x855   :  { %v896_v41 = vrot.slane %v895_v35, 2 }
 0x856   :  { %v889_v43 = vrot.slane %v888_v37, 2 }
 0x857   :  { %v897_v46 = vadd.f32 %v896_v41, %v895_v35  ;;  %v1233_v35 = vld [vmem:[%s2303_s2 + $0x230] sm:$0xff]  ;;  %v1471_v41 = vld [vmem:[%s2303_s2 + $0x218] ss:$0 sm:$0xff] }
 0x858   :  { %v890_v48 = vadd.f32 %v889_v43, %v888_v37  ;;  %v1234_v37 = vld [vmem:[%s2303_s2 + $0x238] sm:$0xff] }
 0x859   :  { %v898_v49 = vrot.slane %v897_v46, 1  ;;  %v1824_v39 = vpack.c.bf16 %v1234_v37, %v1233_v35 }
 0x85a   :  { %v891_v50 = vrot.slane %v890_v48, 1 }
 0x85b   :  { %v899_v51 = vadd.f32 %v898_v49, %v897_v46 }
 0x85c   :  { %v892_v52 = vadd.f32 %v891_v50, %v890_v48 }
 0x85d   :  { %v903_v53 = vmul.f32 0.01, %v899_v51  ;;  %v901_v55 = vmul.f32 %v899_v51, %v1998_v22  ;;  %v1011_v22 = vld [vmem:[%s2303_s2 + $0x1d8] sm:$0xff]  ;;  %v1329_v51 = vld [vmem:[%s2303_s2 + $0x248] sm:$0xff] }
 0x85e   :  { %v902_v56 = vmul.f32 0.01, %v892_v52  ;;  %v900_v57 = vmul.f32 %v892_v52, %v1995_v13  ;;  %v1012_v13 = vld [vmem:[%s2303_s2 + $0x1e0] sm:$0xff]  ;;  %v1330_v52 = vld [vmem:[%s2303_s2 + $0x250] sm:$0xff] }
 0x85f   :  { %v1810_v2 = vpack.c.bf16 %v1012_v13, %v1011_v22 }
 0x860   :  { %v910_v58 = vsel %vm277_vm9, %v903_v53, %v902_v56  ;;  %v906_v59 = vsel %vm277_vm9, %v901_v55, %v900_v57  ;;  %v1828_v53 = vpack.c.bf16 %v1330_v52, %v1329_v51  ;;  %v1331_v55 = vld [vmem:[%s2303_s2 + $0x258] sm:$0xff]  ;;  %v1332_v56 = vld [vmem:[%s2303_s2 + $0x260] sm:$0xff] }
 0x861   :  { %911 = vrot.lane.b32.xlu1 %v910_v58, %s1880_s24  ;;  %1811 = vmatpush3.bf16.msra.mxu1 %v1810_v2  ;;  %v1832_v57 = vpack.c.bf16 %v1332_v56, %v1331_v55  ;;  %v1474_v58 = vld [vmem:[%s2303_s2 + $0x240] ss:$0 sm:$0xff] }
 0x862   :  { %1813 = vmatprep.subr.bf16.mxu1 %v1812_v14 }
 0x8d3   :  { %v912_v60 = vpop.permute.xlu1 %911 }
 0x8d4   :  { %v917_v1 = vsel %vm126_vm5, %v906_v59, %v912_v60 }
 0x8d5   :  { %v918_v42 = vsel %vm300_vm10, %v917_v1, %v915_v61 }
 0x8d6   :  { %1686 = vmatmul.mubr.msk.f32.vlgmr.msra.gmra.mrb[8].mxu0 %vm486_vm13, %v918_v42 }
 0x9a9   :  { %v1002_v4 = vpop.f32.mrb[8].mxu0 }
 0x9aa   :  { %v1003_v5 = vadd.f32 %v1467_v3, %v1002_v4  ;;  %v1687_v6 = vpop.f32.mrb[9].mxu0 }
 0x9ac   :  { %vm1006_vm6 = vcmp.ge.f32.partialorder %v1003_v5, 0.0  ;;  %v1007_v7 = vmul.f32 0.01, %v1003_v5 }
 0x9ae   :  { %v1008_v8 = vsel %vm1006_vm6, %v1003_v5, %v1007_v7  ;;  %v1477_v5 = vld [vmem:[%s2303_s2 + $0x268] ss:$0 sm:$0xff] }
 0x9af   :  { %1697 = vmatmul.mubr.msk.f32.vlgmr.msra.gmra.mrb[8].mxu1 %vm126_vm5, %v1008_v8 }
 0x9b0   :  { %1815 = vmatpush3.bf16.msra.mxu1 %v1812_v14 }
 0x9b1   :  { %1817 = vmatprep.subr.bf16.mxu1 %v1816_v16 }
 0x9b4   :  { %1819 = vmatpush3.bf16.msra.mxu1 %v1816_v16 }
 0x9b5   :  { %1707 = vmatprep.subr.mxu1 %v1138_v21 }
 0x9b8   :  { %1708 = vmatpush3.msra.mxu1 %v1138_v21 }
 0x9b9   :  { %1829 = vmatprep.subr.bf16.mxu1 %v1828_v53 }
 0xa82   :  { %v1087_v18 = vpop.f32.mrb[8].mxu1 }
 0xa83   :  { %v1088_v19 = vadd.f32 %v1469_v17, %v1087_v18  ;;  %v1698_v20 = vpop.f32.mrb[9].mxu1 }
 0xa85   :  { %v1091_v23 = vadd.f32 %v1088_v19, %v2103_v38 }
 0xa87   :  { %vm1092_vm7 = vcmp.ge.f32.partialorder %v1091_v23, 0.0  ;;  %v1093_v24 = vmul.f32 0.01, %v1091_v23 }
 0xa89   :  { %v1094_v25 = vsel %vm1092_vm7, %v1091_v23, %v1093_v24 }
 0xa8a   :  { %v1102_v26 = vrot.slane %v1094_v25, %v2100_v36 }
 0xa8c   :  { %v1110_v27 = vrot.slane %v1102_v26, %v2100_v36  ;;  %v1103_v28 = vcombine.high %v1102_v26, %v1102_v26 }
 0xa8e   :  { %v1121_v29 = vrot.slane %v1110_v27, %v2107_v40  ;;  %v1117_v9 = vrot.slane %v1103_v28, %v2100_v36  ;;  %v1231_v36 = vld [vmem:[%s2303_s2 + $0x220] sm:$0xff] }
 0xa90   :  { %1126 = vrot.lane.b32.xlu1 %v1121_v29, %s1880_s24  ;;  %v1125_v32 = vrot.slane %v1117_v9, %v2107_v40  ;;  %v1232_v40 = vld [vmem:[%s2303_s2 + $0x228] sm:$0xff]  ;;  %s1852_s2 = scalar_lea.vmem %s1436_s8, 256 }
 0xa91   :  { %v1820_v0 = vpack.c.bf16 %v1232_v40, %v1231_v36  ;;  %p1853_p0 = scmp.ne.s32.totalorder %s1436_s8, %s1852_s2  ;;  %p1858_p2 = scmp.lt.s32.totalorder %s1852_s2, %s1852_s2 }
 0xa92   :  { %1128 = vrot.lane.b32.xlu0 %v1125_v32, %s1880_s24 }
 0xa93   :  { %1821 = vmatprep.subr.bf16.mxu0 %v1820_v0  ;;  %p1859_p3 = por %p1858_p2, %p1857_p1 }
 0xa94   :  { %1823 = vmatpush3.bf16.msra.mxu0 %v1820_v0 }
 0xa95   :  { %1825 = vmatprep.subr.bf16.mxu0 %v1824_v39  ;;  %p1860_p4 = pnand %p1859_p3, %p1853_p0 }
 0xa98   :  { %1827 = vmatpush3.bf16.msra.mxu0 %v1824_v39 }
 0xb02   :  { %v1127_v38 = vpop.permute.xlu1 %1126 }
 0xb03   :  { %v1132_v33 = vsel %vm126_vm5, %v2182_v31, %v1127_v38 }
 0xb04   :  { %1709 = vmatprep.mubr.msk.f32.mxu1 %vm698_vm0, %v1132_v33  ;;  %v1129_v34 = vpop.permute.xlu0 %1128 }
 0xb05   :  { %v1133_v63 = vsel %vm126_vm5, %v2178_v30, %v1129_v34 }
 0xb06   :  { %1710 = vmatmul.mubr.msk.f32.vlgmr.msra.gmra.mrb[10].mxu1 %vm698_vm0, %v1133_v63 }
 0xb07   :  { %1831 = vmatpush3.bf16.msra.mxu1 %v1828_v53 }
 0xb08   :  { %1833 = vmatprep.subr.bf16.mxu1 %v1832_v57 }
 0xb0b   :  { %1835 = vmatpush3.bf16.msra.mxu1 %v1832_v57 }
 0xbd9   :  { %v1711_v43 = vpop.f32.mrb[10].mxu1 }
 0xbda   :  { %v1222_v44 = vadd.f32 %v1711_v43, %v1471_v41  ;;  %v1216_v45 = vpop.f32.mrb[11].mxu1 }
 0xbdb   :  { %v1217_v46 = vadd.f32 %v1471_v41, %v1216_v45 }
 0xbdc   :  { %v1228_v47 = vmul.f32 0.01, %v1222_v44  ;;  %vm1226_vm8 = vcmp.ge.f32.partialorder %v1222_v44, 0.0 }
 0xbdd   :  { %vm1225_vm9 = vcmp.ge.f32.partialorder %v1217_v46, 0.0  ;;  %v1227_v48 = vmul.f32 0.01, %v1217_v46 }
 0xbde   :  { %v1230_v50 = vsel %vm1226_vm8, %v1222_v44, %v1228_v47 }
 0xbdf   :  { %v1229_v49 = vsel %vm1225_vm9, %v1217_v46, %v1227_v48 }
 0xbe0   :  { %1720 = vmatprep.mubr.msk.f32.mxu0 %vm126_vm5, %v1229_v49 }
 0xbe1   :  { %1721 = vmatmul.mubr.msk.f32.vlgmr.msra.gmra.mrb[10].mxu0 %vm126_vm5, %v1230_v50 }
 0xcb4   :  { %v1722_v59 = vpop.f32.mrb[10].mxu0 }
 0xcb5   :  { %v1318_v60 = vadd.f32 %v1722_v59, %v1474_v58  ;;  %v1312_v61 = vpop.f32.mrb[11].mxu0 }
 0xcb6   :  { %v1313_v1 = vadd.f32 %v1474_v58, %v1312_v61 }
 0xcb7   :  { %v1322_v42 = vadd.f32 %v1318_v60, %v2178_v30 }
 0xcb8   :  { %v1321_v22 = vadd.f32 %v1313_v1, %v2182_v31 }
 0xcb9   :  { %v1326_v13 = vmul.f32 0.01, %v1322_v42  ;;  %vm1324_vm10 = vcmp.ge.f32.partialorder %v1322_v42, 0.0 }
 0xcba   :  { %v1325_v2 = vmul.f32 0.01, %v1321_v22  ;;  %vm1323_vm11 = vcmp.ge.f32.partialorder %v1321_v22, 0.0 }
 0xcbb   :  { %v1328_v4 = vsel %vm1324_vm10, %v1322_v42, %v1326_v13 }
 0xcbc   :  { %v1327_v3 = vsel %vm1323_vm11, %v1321_v22, %v1325_v2 }
 0xcbd   :  { %1731 = vmatprep.mubr.msk.f32.mxu1 %vm126_vm5, %v1327_v3 }
 0xcbe   :  { %1732 = vmatmul.mubr.msk.f32.vlgmr.msra.gmra.mrb[12].mxu1 %vm126_vm5, %v1328_v4 }
 0xd91   :  { %v1733_v6 = vpop.f32.mrb[12].mxu1 }
 0xd92   :  { %v1416_v7 = vadd.f32 %v1733_v6, %v1477_v5  ;;  %v1410_v8 = vpop.f32.mrb[13].mxu1 }
 0xd93   :  { %v1411_v30 = vadd.f32 %v1477_v5, %v1410_v8 }
 0xd94   :  { %vm1420_vm12 = vcmp.ge.f32.partialorder %v1416_v7, 0.0  ;;  %v1422_v31 = vmul.f32 0.01, %v1416_v7 }
 0xd95   :  { %vm1419_vm13 = vcmp.ge.f32.partialorder %v1411_v30, 0.0  ;;  %v1421_v10 = vmul.f32 0.01, %v1411_v30 }
 0xd96   :  { %v1424_v11 = vsel %vm1420_vm12, %v1416_v7, %v1422_v31 }
 0xd97   :  { %v1426_v12 = vmul.f32 %v1424_v11, %v1973_v62  ;;  %v1423_v14 = vsel %vm1419_vm13, %v1411_v30, %v1421_v10 }
 0xd98   :  { %v1425_v15 = vmul.f32 %v1423_v14, %v1971_v54 }
 0xd99   :  { %1429 = vst.msk [vmem:[#allocation2 + $0x8] sm:$0xff] %vm1427_vm14, %v1426_v12 }
 0xd9a   :  { %1428 = vst.msk [vmem:[#allocation2] sm:$0xff] %vm1427_vm14, %v1425_v15 }
 0xd9b   :  { %1863 = shalt.err (!%p1860_p4)
}
 0xd9c   :  { %s1864_s11 = scalar_lea.hbm %s2304_s3, 256 }
 0xd9d   :  { %p1865_p5 = scmp.ne.s32.totalorder %s2304_s3, %s1864_s11  ;;  %p1868_p6 = scmp.lt.u32.totalorder %s1864_s11, %s2304_s3 }
 0xd9f   :  { %p1870_p7 = pnand %p1868_p6, %p1865_p5 }
 0xda1   :  { %1873 = shalt.err (!%p1870_p7)
}
 0xda2   :  { %s1884_s16 = smov 128   ;;  %s1885_s17 = smov 8  }
 0xda3   :  { %1441 = dma.vmem_to_hbm [thread:$0]  %s1436_s8, 256, %s2304_s3, [#allocation3], %s1884_s16, %s1884_s16, %s1885_s17  }
 0xda4   :  { %1874 = dma.done.wait [#allocation3], 256  }
 0xda5   :  { %1875 = vsyncadd [#allocation3], 4294967040 }
 0xda6   :  { %1445 = vsyncpa [#allocation3], 1 }

</bundles_post_ra>
